<compile_context>
chip_gen: v5e
topology: v5e:2x2
jax: 0.10.0
libtpu: 0.0.40
codegen_flags: <defaults>
</compile_context>

<pallas_src>
import math

import jax
import jax.numpy as jnp
from jax.experimental import pallas as pl
from jax.experimental.pallas import tpu as pltpu


def _round_up(x: int, m: int) -> int:
    return ((x + m - 1) // m) * m


def _random_action_kernel(bits_ref, low_ref, high_ref, act_ref):
    # bits_ref: (TB, W) uint32 -- one raw 32-bit draw per action element
    # low_ref / high_ref: (1, W) lane-dense tiled action-space bounds
    # act_ref:  (TB, W) lane-dense action slab (W = L * act_dim, multiple of 128)
    bits = bits_ref[...]
    # uniform in [0, 1): top 24 bits are exactly representable in float32
    u = (bits >> jnp.uint32(8)).astype(jnp.float32) * jnp.float32(1.0 / (1 << 24))
    low = low_ref[...]                                   # (1, W) broadcasts over TB
    high = high_ref[...]
    act_ref[...] = low + (high - low) * u


def random_action_policy_forward(obs, low, high, key, state=None):
    """Pallas-backed equivalent of RandomActionPolicy.forward for a Box space.

    obs:  (B, obs_dim) float32 -- only its leading dim is used (values ignored)
    low:  (act_dim,)   float32 -- action_space.low
    high: (act_dim,)   float32 -- action_space.high
    key:  jax PRNG key          -- deterministic randomness source
    Returns (act, state) with act of shape (B, act_dim) float32.
    """
    B = obs.shape[0]            # RandomActionPolicy never reads obs values.
    A = int(low.shape[0])

    # Pack L action vectors per slab row so the lane dimension is a multiple
    # of 128 -> unmasked, lane-dense stores instead of 4/128-lane vst.msk.
    L = 128 // math.gcd(A, 128)
    W = L * A
    R = pl.cdiv(B, L)                                  # slab rows needed
    TB = min(512, _round_up(max(R, 1), 8))             # rows per grid step (sublane-aligned)
    grid = pl.cdiv(R, TB)
    R_pad = grid * TB

    bits = jax.random.bits(key, (R_pad, W), dtype=jnp.uint32)
    low_t = jnp.tile(low.astype(jnp.float32), L).reshape(1, W)
    high_t = jnp.tile(high.astype(jnp.float32), L).reshape(1, W)

    slab = pl.pallas_call(
        _random_action_kernel,
        out_shape=jax.ShapeDtypeStruct((R_pad, W), jnp.float32),
        grid_spec=pltpu.PrefetchScalarGridSpec(
            num_scalar_prefetch=0,
            grid=(grid,),
            in_specs=[
                pl.BlockSpec((TB, W), lambda i: (i, 0)),   # random bits, tiled over rows
                pl.BlockSpec((1, W), lambda i: (0, 0)),    # low  (resident, tiny)
                pl.BlockSpec((1, W), lambda i: (0, 0)),    # high (resident, tiny)
            ],
            out_specs=pl.BlockSpec((TB, W), lambda i: (i, 0)),
        ),
        compiler_params=pltpu.CompilerParams(
            dimension_semantics=("parallel",),   # v7x: shard row tiles across both TCs
        ),
    )(bits, low_t, high_t)

    act = slab.reshape(R_pad * L, A)[:B]
    # TODO(synk): Discrete action spaces (randint over n actions) not implemented;
    # only gym.spaces.Box is handled here.
    return act, state


if __name__ == "__main__":
    key = jax.random.PRNGKey(0)
    B, obs_dim, act_dim = 8, 16, 4

    k_obs, k_act = jax.random.split(key)
    obs = jax.random.normal(k_obs, (B, obs_dim), dtype=jnp.float32)

    # Deterministic Box action-space bounds (synthetic, in-script).
    low = jnp.array([-1.0, -2.0, -0.5, -1.5], dtype=jnp.float32)
    high = jnp.array([1.0, 2.0, 0.5, 1.5], dtype=jnp.float32)

    act, state = random_action_policy_forward(obs, low, high, key=k_act, state=None)
    act = jax.block_until_ready(act)

    assert act.shape == (B, act_dim)
    assert act.dtype == jnp.float32
    assert bool(jnp.all(act >= low[None, :])) and bool(jnp.all(act <= high[None, :]))
    assert state is None
    print("KERNEL_OK")
</pallas_src>

<mosaic_0001>
module attributes {stable_mosaic.version = 11 : i64} {
  func.func @_random_action_kernel(%arg0: i32, %arg1: memref<8x128xi32, #tpu.memory_space<vmem>>, %arg2: memref<1x128xf32, #tpu.memory_space<vmem>>, %arg3: memref<1x128xf32, #tpu.memory_space<vmem>>, %arg4: memref<8x128xf32, #tpu.memory_space<vmem>>) attributes {dimension_semantics = [#tpu.dimension_semantics<parallel>], iteration_bounds = array<i64: 1>, scalar_prefetch = 0 : i64, scratch_operands = 0 : i64, tpu.core_type = #tpu.core_type<tc>, window_params = [{transform_indices = @transform_0, window_bounds = array<i64: 8, 128>}, {pipeline_mode = #tpu.pipeline_mode<synchronous>, transform_indices = @transform_1, window_bounds = array<i64: 1, 128>}, {pipeline_mode = #tpu.pipeline_mode<synchronous>, transform_indices = @transform_2, window_bounds = array<i64: 1, 128>}, {transform_indices = @transform_3, window_bounds = array<i64: 8, 128>}]} {
    %c0 = arith.constant 0 : index
    %c0_0 = arith.constant 0 : index
    %0 = vector.load %arg1[%c0, %c0_0] : memref<8x128xi32, #tpu.memory_space<vmem>>, vector<8x128xi32>
    %c8_i32 = arith.constant 8 : i32
    %1 = vector.broadcast %c8_i32 : i32 to vector<8x128xi32>
    %2 = arith.shrui %0, %1 : vector<8x128xi32>
    %3 = arith.uitofp %2 : vector<8x128xi32> to vector<8x128xf32>
    %cst = arith.constant 5.96046448E-8 : f32
    %4 = vector.broadcast %cst : f32 to vector<8x128xf32>
    %5 = arith.mulf %3, %4 : vector<8x128xf32>
    %c0_1 = arith.constant 0 : index
    %c0_2 = arith.constant 0 : index
    %6 = vector.load %arg2[%c0_1, %c0_2] : memref<1x128xf32, #tpu.memory_space<vmem>>, vector<1x128xf32>
    %c0_3 = arith.constant 0 : index
    %c0_4 = arith.constant 0 : index
    %7 = vector.load %arg3[%c0_3, %c0_4] : memref<1x128xf32, #tpu.memory_space<vmem>>, vector<1x128xf32>
    %8 = arith.subf %7, %6 : vector<1x128xf32>
    %9 = vector.broadcast %8 : vector<1x128xf32> to vector<8x128xf32>
    %10 = arith.mulf %9, %5 : vector<8x128xf32>
    %11 = vector.broadcast %6 : vector<1x128xf32> to vector<8x128xf32>
    %12 = arith.addf %11, %10 : vector<8x128xf32>
    %c0_5 = arith.constant 0 : index
    %c0_6 = arith.constant 0 : index
    %13 = vector.load %arg4[%c0_5, %c0_6] : memref<8x128xf32, #tpu.memory_space<vmem>>, vector<8x128xf32>
    tpu.vector_store %arg4[%c0_5, %c0_6], %12 {strides = array<i32>} : memref<8x128xf32, #tpu.memory_space<vmem>>, vector<8x128xf32>,
    return
  }
  func.func @transform_0(%arg0: i32) -> (i32, i32) {
    %c0_i32 = arith.constant 0 : i32
    %c0_i32_0 = arith.constant 0 : i32
    return %arg0, %c0_i32 : i32, i32
  }
  func.func @transform_1(%arg0: i32) -> (i32, i32) {
    %c0_i32 = arith.constant 0 : i32
    %c0_i32_0 = arith.constant 0 : i32
    %c0_i32_1 = arith.constant 0 : i32
    return %c0_i32, %c0_i32_0 : i32, i32
  }
  func.func @transform_2(%arg0: i32) -> (i32, i32) {
    %c0_i32 = arith.constant 0 : i32
    %c0_i32_0 = arith.constant 0 : i32
    %c0_i32_1 = arith.constant 0 : i32
    return %c0_i32, %c0_i32_0 : i32, i32
  }
  func.func @transform_3(%arg0: i32) -> (i32, i32) {
    %c0_i32 = arith.constant 0 : i32
    %c0_i32_0 = arith.constant 0 : i32
    return %arg0, %c0_i32 : i32, i32
  }
}

</mosaic_0001>

<bundles_post_ra>
// kernel: tpu_custom_call.1
= control target key start
LH: loop header
LB: loop body
LE: loop exit
PB: predicated region body
PF: predicated region fallthrough
CT: control target
= control target key end

     0   :  { %8 = vsyncpa [#allocation3], 0  ;;  %s199_s0 = inlined_call_operand.hbm [shape: u32[8,128], index: 0, kind: input, shape index: {}]   ;;  %s200_s1 = inlined_call_operand.hbm [shape: f32[1,128], index: 1, kind: input, shape index: {}]   ;;  %s201_s2 = inlined_call_operand.vmem [shape: f32[1,128], index: 2, kind: input, shape index: {}]   ;;  %s202_s3 = inlined_call_operand.hbm [shape: f32[8,128], index: 3, kind: output, shape index: {}]  }
   0x1   :  { %9 = vsyncpa [#allocation6], 0 }
   0x2   :  { %10 = vsyncpa [#allocation4], 0  ;;  %s16_s14 = sshll.u32 %s199_s0, 4  ;;  %s164_s15 = smov [#allocation2]   ;;  %s17_s14 = int_to_ptr.hbm [resolvable:$true] %s16_s14 }
   0x3   :  { %s18_s16 = sshll.u32 %s164_s15, 4  ;;  %s27_s19 = sshll.u32 %s200_s1, 4  ;;  %s19_s16 = int_to_ptr.vmem [resolvable:$true] %s18_s16  ;;  %s28_s19 = int_to_ptr.hbm [resolvable:$true] %s27_s19 }
   0x4   :  { %21 = dma.hbm_to_vmem [thread:$0]  %s17_s14, 128, %s19_s16, [#allocation3]  }
   0x5   :  { %s165_s20 = smov [#allocation5]  }
   0x6   :  { %s29_s21 = sshll.u32 %s165_s20, 4  ;;  %s30_s21 = int_to_ptr.vmem [resolvable:$true] %s29_s21 }
   0x7   :  { %32 = dma.hbm_to_vmem [thread:$0]  %s28_s19, 16, %s30_s21, [#allocation6]  }
   0x8   :  { %158 = dma.done.wait [#allocation3], 128  }
   0x9   :  { %159 = vsyncadd [#allocation3], 4294967168 }
   0xa   :  { %160 = dma.done.wait [#allocation6], 16  }
   0xb   :  { %161 = vsyncadd [#allocation6], 4294967280  ;;  %v43_v0 = vld [vmem:[#allocation2] sm:$0xff]  ;;  %v52_v2 = vld [vmem:[#allocation5] sm:$0x1]  ;;  %s166_s1 = smov [#allocation7]  }
   0xc   :  { %v44_v1 = vshrl.u32 %v43_v0, 8  ;;  %v53_v3 = vld [vmem:[%s201_s2] sm:$0x1]  ;;  %v85_v13 = vld [vmem:[#allocation5] ss:$0 sm:$0xff]  ;;  %s69_s23 = sshll.u32 %s166_s1, 4  ;;  %s70_s23 = int_to_ptr.vmem [resolvable:$true] %s69_s23 }
   0xd   :  { %v54_v8 = vsub.f32 %v53_v3, %v52_v2  ;;  %s71_s26 = sshll.u32 %s202_s3, 4  ;;  %s72_s26 = int_to_ptr.hbm [resolvable:$true] %s71_s26 }
   0xe   :  { %v45_v4 = vshrl.u32 %v44_v1, 16  ;;  %v46_v5 = vand.u32 65535, %v44_v1 }
   0xf   :  { %v56_v11 = vperm.slane %v54_v8, 0 }
  0x10   :  { %v47_v6 = vcvt.s32.f32 %v45_v4  ;;  %v49_v7 = vcvt.s32.f32 %v46_v5 }
  0x12   :  { %v48_v9 = vmul.f32 65536.0, %v47_v6 }
  0x14   :  { %v50_v10 = vadd.f32 %v49_v7, %v48_v9 }
  0x16   :  { %v51_v12 = vmul.f32 5.9604645e-08, %v50_v10 }
  0x18   :  { %v58_v14 = vmul.f32 %v56_v11, %v51_v12 }
  0x1a   :  { %v62_v15 = vadd.f32 %v85_v13, %v58_v14 }
  0x1c   :  { %63 = vst [vmem:[#allocation7] sm:$0xff] %v62_v15 }
  0x1d   :  { %74 = dma.vmem_to_hbm [thread:$0]  %s70_s23, 128, %s72_s26, [#allocation4]  }
  0x1e   :  { %162 = dma.done.wait [#allocation4], 128  }
  0x1f   :  { %163 = vsyncadd [#allocation4], 4294967168 }
  0x20   :  { %79 = vsyncpa [#allocation3], 1 }
  0x21   :  { %80 = vsyncpa [#allocation6], 1 }
  0x22   :  { %81 = vsyncpa [#allocation4], 1 }

</bundles_post_ra>
